<compile_context>
chip_gen: v5e
topology: v5e:2x2
jax: 0.10.0
libtpu: 0.0.40
codegen_flags: <defaults>
</compile_context>

<pallas_src>
import functools

import jax
import jax.numpy as jnp
from jax.experimental import pallas as pl
from jax.experimental.pallas import tpu as pltpu

LANES = 128
TM_MAX = 1024  # max sublane-tile rows per grid step (multiple of 8)


def _absloss_kernel(o_ref, t_ref, out_ref, *, n_rows, tm):
    # Elementwise |t - o| / t on the (tm, 128) block, accumulated in f32.
    o = o_ref[...].astype(jnp.float32)
    t = t_ref[...].astype(jnp.float32)
    loss = jnp.abs(t - o) / t  # VPU (+ divide); exact division for accuracy

    # Mask rows past the real end of the slab (partial last grid block reads
    # unspecified data); masked lanes contribute exactly 0.
    row_ids = pl.program_id(0) * tm + jax.lax.broadcasted_iota(
        jnp.int32, (tm, LANES), 0
    )
    loss = jnp.where(row_ids < n_rows, loss, jnp.float32(0.0))

    # Fold the block's sublane groups into an (8, 128) partial sum — purely
    # VPU elementwise adds (vreg-aligned reshape), no cross-lane XLU work and
    # no loop-carried scalar chain.
    partial = loss.reshape(tm // 8, 8, LANES).sum(axis=0)
    out_ref[0] = partial


def abs_loss(outputs, targets):
    """mean(|targets - outputs| / targets) computed with a Pallas TPU kernel."""
    assert outputs.shape == targets.shape
    total_n = outputs.size

    # ravel/reshape are layout-preserving views (no HBM copy). Keep native
    # dtype; the kernel casts to f32 on the fly.
    o_flat = jnp.ravel(outputs)
    t_flat = jnp.ravel(targets)

    rem = total_n % LANES
    if rem:
        # Rare ragged case: tiny (<128 elem) pad so the slab reshapes to
        # (rows, 128).  Pad with o=t=1 so padded elements contribute 0.
        pad = LANES - rem
        o_flat = jnp.concatenate([o_flat, jnp.ones((pad,), o_flat.dtype)])
        t_flat = jnp.concatenate([t_flat, jnp.ones((pad,), t_flat.dtype)])

    rows = o_flat.size // LANES
    o2d = o_flat.reshape(rows, LANES)
    t2d = t_flat.reshape(rows, LANES)

    # Row-tile size: as large as useful, clamped (to a multiple of 8) for
    # small inputs.
    tm = min(TM_MAX, ((rows + 7) // 8) * 8)
    num_blocks = pl.cdiv(rows, tm)

    kernel = functools.partial(_absloss_kernel, n_rows=rows, tm=tm)

    partials = pl.pallas_call(
        kernel,
        out_shape=jax.ShapeDtypeStruct((num_blocks, 8, LANES), jnp.float32),
        grid_spec=pltpu.PrefetchScalarGridSpec(
            num_scalar_prefetch=0,
            grid=(num_blocks,),
            in_specs=[
                pl.BlockSpec((tm, LANES), lambda i: (i, 0)),
                pl.BlockSpec((tm, LANES), lambda i: (i, 0)),
            ],
            out_specs=pl.BlockSpec((1, 8, LANES), lambda i: (i, 0, 0)),
        ),
        compiler_params=pltpu.CompilerParams(
            # Independent per-block partial sums -> shardable across both
            # TensorCores on v7x (no effect on v5e/v6e).
            dimension_semantics=("parallel",)
        ),
    )(o2d, t2d)

    # Tiny finishing reduction (num_blocks x 8 x 128 partials) + mean divide.
    return jnp.sum(partials) / jnp.float32(total_n)


if __name__ == "__main__":
    key = jax.random.PRNGKey(0)
    k1, k2 = jax.random.split(key)
    # NCHW-like shapes consistent with a generic regression loss input.
    outputs = jax.random.normal(k1, (2, 4, 16, 16), dtype=jnp.float32)
    # Keep targets bounded away from zero (the loss divides by targets).
    targets = jax.random.uniform(
        k2, (2, 4, 16, 16), dtype=jnp.float32, minval=0.5, maxval=2.0
    )

    loss = abs_loss(outputs, targets)
    jax.block_until_ready(loss)

    # Reference check in plain JAX.
    ref = jnp.mean(jnp.abs(targets - outputs) / targets)
    assert jnp.allclose(loss, ref, rtol=1e-5, atol=1e-6), (loss, ref)
    print("KERNEL_OK")
</pallas_src>

<mosaic_0001>
module attributes {stable_mosaic.version = 11 : i64} {
  func.func @_absloss_kernel(%arg0: i32, %arg1: memref<16x128xf32, #tpu.memory_space<vmem>>, %arg2: memref<16x128xf32, #tpu.memory_space<vmem>>, %arg3: memref<1x8x128xf32, #tpu.memory_space<vmem>>) attributes {dimension_semantics = [#tpu.dimension_semantics<parallel>], iteration_bounds = array<i64: 1>, scalar_prefetch = 0 : i64, scratch_operands = 0 : i64, tpu.core_type = #tpu.core_type<tc>, window_params = [{transform_indices = @transform_0, window_bounds = array<i64: 16, 128>}, {transform_indices = @transform_1, window_bounds = array<i64: 16, 128>}, {transform_indices = @transform_2, window_bounds = array<i64: 1, 8, 128>}]} {
    %c0 = arith.constant 0 : index
    %c0_0 = arith.constant 0 : index
    %0 = vector.load %arg1[%c0, %c0_0] : memref<16x128xf32, #tpu.memory_space<vmem>>, vector<16x128xf32>
    %c0_1 = arith.constant 0 : index
    %c0_2 = arith.constant 0 : index
    %1 = vector.load %arg2[%c0_1, %c0_2] : memref<16x128xf32, #tpu.memory_space<vmem>>, vector<16x128xf32>
    %2 = arith.subf %1, %0 : vector<16x128xf32>
    %3 = math.absf %2 : vector<16x128xf32>
    %4 = arith.divf %3, %1 : vector<16x128xf32>
    %c16_i32 = arith.constant 16 : i32
    %5 = arith.muli %arg0, %c16_i32 : i32
    %6 = tpu.iota {dimensions = array<i32: 0>} : vector<16x128xi32>
    %7 = vector.broadcast %5 : i32 to vector<16x128xi32>
    %8 = arith.addi %7, %6 : vector<16x128xi32>
    %c16_i32_3 = arith.constant 16 : i32
    %9 = vector.broadcast %c16_i32_3 : i32 to vector<16x128xi32>
    %10 = arith.cmpi slt, %8, %9 : vector<16x128xi32>
    %cst = arith.constant 0.000000e+00 : f32
    %11 = vector.broadcast %cst : f32 to vector<16x128xf32>
    %12 = arith.select %10, %4, %11 : vector<16x128xi1>, vector<16x128xf32>
    %13 = vector.shape_cast %12 : vector<16x128xf32> to vector<2x8x128xf32>
    %cst_4 = arith.constant dense<0.000000e+00> : vector<8x128xf32>
    %14 = vector.multi_reduction <add>, %13, %cst_4 [0] : vector<2x8x128xf32> to vector<8x128xf32>
    %c0_5 = arith.constant 0 : index
    %c0_6 = arith.constant 0 : index
    %c0_7 = arith.constant 0 : index
    %15 = vector.load %arg3[%c0_5, %c0_6, %c0_7] : memref<1x8x128xf32, #tpu.memory_space<vmem>>, vector<1x8x128xf32>
    %16 = vector.shape_cast %15 : vector<1x8x128xf32> to vector<8x128xf32>
    %17 = vector.shape_cast %14 : vector<8x128xf32> to vector<1x8x128xf32>
    tpu.vector_store %arg3[%c0_5, %c0_6, %c0_7], %17 {strides = array<i32>} : memref<1x8x128xf32, #tpu.memory_space<vmem>>, vector<1x8x128xf32>,
    return
  }
  func.func @transform_0(%arg0: i32) -> (i32, i32) {
    %c0_i32 = arith.constant 0 : i32
    %c0_i32_0 = arith.constant 0 : i32
    return %arg0, %c0_i32 : i32, i32
  }
  func.func @transform_1(%arg0: i32) -> (i32, i32) {
    %c0_i32 = arith.constant 0 : i32
    %c0_i32_0 = arith.constant 0 : i32
    return %arg0, %c0_i32 : i32, i32
  }
  func.func @transform_2(%arg0: i32) -> (i32, i32, i32) {
    %c0_i32 = arith.constant 0 : i32
    %c0_i32_0 = arith.constant 0 : i32
    %c0_i32_1 = arith.constant 0 : i32
    return %arg0, %c0_i32, %c0_i32_0 : i32, i32, i32
  }
}

</mosaic_0001>

<bundles_post_ra>
// kernel: tpu_custom_call.1
= control target key start
LH: loop header
LB: loop body
LE: loop exit
PB: predicated region body
PF: predicated region fallthrough
CT: control target
= control target key end

     0   :  { %7 = vsyncpa [#allocation3], 0  ;;  %s229_s0 = inlined_call_operand.hbm [shape: f32[16,128], index: 0, kind: input, shape index: {}]   ;;  %s230_s1 = inlined_call_operand.hbm [shape: f32[16,128], index: 1, kind: input, shape index: {}]   ;;  %s231_s2 = inlined_call_operand.hbm [shape: f32[1,8,128], index: 2, kind: output, shape index: {}]  }
   0x1   :  { %8 = vsyncpa [#allocation6], 0 }
   0x2   :  { %9 = vsyncpa [#allocation4], 0  ;;  %s14_s11 = sshll.u32 %s229_s0, 4  ;;  %s200_s12 = smov [#allocation2]   ;;  %s15_s11 = int_to_ptr.hbm [resolvable:$true] %s14_s11 }
   0x3   :  { %s16_s13 = sshll.u32 %s200_s12, 4  ;;  %s27_s16 = sshll.u32 %s230_s1, 4  ;;  %s17_s13 = int_to_ptr.vmem [resolvable:$true] %s16_s13  ;;  %s28_s16 = int_to_ptr.hbm [resolvable:$true] %s27_s16 }
   0x4   :  { %s201_s17 = smov 128   ;;  %s202_s18 = smov 8  }
   0x5   :  { %22 = dma.hbm_to_vmem [thread:$0]  %s15_s11, 256, %s17_s13, [#allocation3], %s201_s17, %s201_s17, %s202_s18  }
   0x6   :  { %s203_s19 = smov [#allocation5]  }
   0x7   :  { %s29_s20 = sshll.u32 %s203_s19, 4  ;;  %s30_s20 = int_to_ptr.vmem [resolvable:$true] %s29_s20 }
   0x8   :  { %35 = dma.hbm_to_vmem [thread:$0]  %s28_s16, 256, %s30_s20, [#allocation6], %s201_s17, %s201_s17, %s202_s18  }
   0x9   :  { %194 = dma.done.wait [#allocation3], 256  }
   0xa   :  { %195 = vsyncadd [#allocation3], 4294967040 }
   0xb   :  { %196 = dma.done.wait [#allocation6], 256  }
   0xc   :  { %197 = vsyncadd [#allocation6], 4294967040  ;;  %v46_v0 = vld [vmem:[#allocation5] sm:$0xff]  ;;  %v47_v1 = vld [vmem:[#allocation5 + $0x8] sm:$0xff]  ;;  %s204_s0 = smov [#allocation7]   ;;  %s102_s23 = sshll.u32 %s231_s2, 4  ;;  %s103_s23 = int_to_ptr.hbm [resolvable:$true] %s102_s23 }
   0xd   :  { %118 = vrcp.f32 %v46_v0  ;;  %v44_v2 = vld [vmem:[#allocation2] sm:$0xff]  ;;  %v45_v4 = vld [vmem:[#allocation2 + $0x8] sm:$0xff]  ;;  %vm57_vm0 = vweird.f32 %v46_v0  ;;  %v61_v8 = vand.u32 2147483647, %v46_v0  ;;  %v63_v9 = vand.u32 2147483648, %v46_v0  ;;  %s100_s1 = sshll.u32 %s204_s0, 4  ;;  %s101_s1 = int_to_ptr.vmem [resolvable:$true] %s100_s1 }
   0xe   :  { %120 = vrcp.f32 %v47_v1  ;;  %v48_v6 = vsub.f32 %v46_v0, %v44_v2  ;;  %v49_v11 = vsub.f32 %v47_v1, %v45_v4  ;;  %v78_v13 = vand.u32 2147483648, %v47_v1 }
   0xf   :  { %vm72_vm2 = vweird.f32 %v47_v1  ;;  %v76_v15 = vand.u32 2147483647, %v47_v1  ;;  %v64_v17 = vor.u32 1.1754944e-38, %v63_v9  ;;  %vm62_vm5 = vcmp.eq.f32.partialorder %v61_v8, 8.507059e+37 }
  0x10   :  { %v50_v19 = vand.u32 2147483647, %v48_v6  ;;  %v79_v21 = vor.u32 1.1754944e-38, %v78_v13  ;;  %v51_v22 = vand.u32 2147483647, %v49_v11 }
  0x11   :  { %vm77_vm7 = vcmp.eq.f32.partialorder %v76_v15, 8.507059e+37 }
  0x13   :  { %v119_v3 = vpop.eup %118 }
  0x14   :  { %v121_v5 = vpop.eup %120  ;;  %v53_v7 = vmul.f32 %v119_v3, %v46_v0  ;;  %vm58_vm1 = vweird.f32 %v119_v3 }
  0x15   :  { %v68_v10 = vmul.f32 %v121_v5, %v47_v1  ;;  %vm73_vm3 = vweird.f32 %v121_v5  ;;  %vm59_vm4 = vmor %vm57_vm0, %vm58_vm1 }
  0x16   :  { %v54_v12 = vsub.f32 1.0, %v53_v7  ;;  %vm74_vm6 = vmor %vm72_vm2, %vm73_vm3 }
  0x17   :  { %v69_v14 = vsub.f32 1.0, %v68_v10 }
  0x18   :  { %v55_v16 = vmul.f32 %v119_v3, %v54_v12 }
  0x19   :  { %v70_v18 = vmul.f32 %v121_v5, %v69_v14 }
  0x1a   :  { %v56_v20 = vadd.f32 %v119_v3, %v55_v16 }
  0x1b   :  { %v71_v23 = vadd.f32 %v121_v5, %v70_v18 }
  0x1c   :  { %v60_v24 = vsel %vm59_vm4, %v119_v3, %v56_v20 }
  0x1d   :  { %v65_v25 = vsel %vm62_vm5, %v64_v17, %v60_v24  ;;  %v75_v26 = vsel %vm74_vm6, %v121_v5, %v71_v23 }
  0x1e   :  { %v66_v27 = vmul.f32 %v65_v25, %v50_v19  ;;  %v80_v28 = vsel %vm77_vm7, %v79_v21, %v75_v26 }
  0x1f   :  { %v81_v29 = vmul.f32 %v80_v28, %v51_v22 }
  0x21   :  { %v93_v30 = vadd.f32 %v81_v29, %v66_v27 }
  0x23   :  { %94 = vst [vmem:[#allocation7] sm:$0xff] %v93_v30 }
  0x24   :  { %105 = dma.vmem_to_hbm [thread:$0]  %s101_s1, 128, %s103_s23, [#allocation4]  }
  0x25   :  { %198 = dma.done.wait [#allocation4], 128  }
  0x26   :  { %199 = vsyncadd [#allocation4], 4294967168 }
  0x27   :  { %110 = vsyncpa [#allocation3], 1 }
  0x28   :  { %111 = vsyncpa [#allocation6], 1 }
  0x29   :  { %112 = vsyncpa [#allocation4], 1 }

</bundles_post_ra>
